<compile_context>
chip_gen: v6e
topology: v6e:2x2x1
jax: 0.10.0
libtpu: 0.0.40
codegen_flags: <defaults>
</compile_context>

<pallas_src>
import functools

import jax
import jax.numpy as jnp
from jax.experimental import pallas as pl
from jax.experimental.pallas import tpu as pltpu


def _channel_attention_kernel(x_ref, w1_ref, w2_ref, o_ref, acc_ref, *,
                              inv_hw, hw_total, hw_tile, needs_mask):
    # x_ref  : (1, C, hw_tile)   current spatial chunk of one batch element
    # w1_ref : (hidden, C)       fc1 weight (resident in VMEM)
    # w2_ref : (C, hidden)       fc2 weight (resident in VMEM)
    # o_ref  : (1, C, 1)         sigmoid(fc2(relu(fc1(avg))) + fc2(relu(fc1(max))))
    # acc_ref: (C, 2) f32        col 0: running sum, col 1: running max
    k = pl.program_id(1)
    c = acc_ref.shape[0]

    @pl.when(k == 0)
    def _init():
        acc_ref[:, 0:1] = jnp.zeros((c, 1), jnp.float32)
        acc_ref[:, 1:2] = jnp.full((c, 1), -jnp.inf, jnp.float32)

    x_nat = x_ref[0]                                    # (C, hw_tile) native dtype
    if needs_mask:
        lane = jax.lax.broadcasted_iota(jnp.int32, x_nat.shape, 1)
        valid = (k * hw_tile + lane) < hw_total
        x_max_src = jnp.where(valid, x_nat,
                              jnp.asarray(-jnp.inf, dtype=x_nat.dtype))
        x_sum_src = jnp.where(valid, x_nat.astype(jnp.float32), 0.0)
    else:
        x_max_src = x_nat                               # max in native dtype
        x_sum_src = x_nat.astype(jnp.float32)           # f32 sum accumulation

    # Per-chunk reduce straight into the tiny accumulator (cheap XLU/VPU work,
    # hidden under the HBM DMA; no full-width accumulator store round-trips).
    acc_ref[:, 0:1] += jnp.sum(x_sum_src, axis=-1, keepdims=True)
    acc_ref[:, 1:2] = jnp.maximum(
        acc_ref[:, 1:2],
        jnp.max(x_max_src, axis=-1, keepdims=True).astype(jnp.float32))

    @pl.when(k == pl.num_programs(1) - 1)
    def _epilogue():
        # Fused fc1 over both pooled branches: (hidden, C) @ (C, 2).
        hid = jnp.maximum(
            jnp.dot(w1_ref[...], acc_ref[...],
                    preferred_element_type=jnp.float32), 0.0)        # (hidden, 2)
        # relu(w1 @ (sum * inv_hw)) == inv_hw * relu(w1 @ sum)  since inv_hw > 0,
        # and fc2 is linear, so both branches merge into a single matvec.
        combined = hid[:, 0:1] * inv_hw + hid[:, 1:2]                # (hidden, 1)
        out_col = jnp.dot(w2_ref[...], combined,
                          preferred_element_type=jnp.float32)        # (C, 1)
        o_ref[...] = jax.nn.sigmoid(out_col)[None].astype(o_ref.dtype)


def _vmem_capacity_bytes():
    try:
        return int(pltpu.get_tpu_info().vmem_capacity_bytes)
    except Exception:
        return 128 << 20   # v5e/v6e default; v7x reports 64 MiB via get_tpu_info


def _pick_hw_tile(hw_total, c, itemsize, budget_bytes, min_chunk_bytes):
    """Pick a lane-dense (multiple-of-128) spatial tile.

    Capped so the streamed-x double buffer (2 * C * tile * itemsize) fits the
    budget; floored so each chunk carries >= min_chunk_bytes of HBM traffic
    (per-grid-step overhead ~0.35 us must stay << DMA time).  H*W <= 128 uses a
    single full-extent block; non-divisible tails are masked in the kernel.
    """
    if hw_total <= 128:
        return hw_total
    per_col = c * itemsize                       # bytes per spatial position
    max_tile = max(128, (budget_bytes // (2 * per_col)) // 128 * 128)
    min_tile = -(-min_chunk_bytes // per_col)    # ceil div
    min_tile = max(128, -(-min_tile // 128) * 128)
    cap = (hw_total // 128) * 128                # largest lane-aligned tile <= H*W
    tile = min(max_tile, cap)
    if tile < min_tile:                          # chunk-byte floor beats the cap
        tile = min(min_tile, cap)
    # Prefer an exact divisor (no tail masking) if one sits close below.
    if hw_total % tile != 0:
        t = (tile // 128) * 128
        lo = max(128, tile // 2)
        while t >= lo:
            if hw_total % t == 0:
                return t
            t -= 128
    return tile


def channel_attention(x, w_fc1, w_fc2, *, hw_tile=None):
    """x: (N, C, H, W); w_fc1: (C//16, C, 1, 1); w_fc2: (C, C//16, 1, 1)."""
    n, c, h, w = x.shape
    hidden = w_fc1.shape[0]
    assert w_fc1.shape == (hidden, c, 1, 1)
    assert w_fc2.shape == (c, hidden, 1, 1)

    hw_total = h * w
    x_flat = x.reshape(n, c, hw_total)           # free reshape, stays NC(HW)
    w1 = w_fc1.reshape(hidden, c)                # (hidden, C)
    w2 = w_fc2.reshape(c, hidden)                # (C, hidden)

    itemsize = jnp.dtype(x.dtype).itemsize
    vmem_cap = _vmem_capacity_bytes()
    # Generation-aware budgets: ~30% of physical VMEM for the streamed-x double
    # buffer; bigger per-chunk byte floor on high-HBM-bandwidth parts (v7x).
    x_budget = int(vmem_cap * 0.30)
    min_chunk = (2 << 20) if vmem_cap <= (64 << 20) else (1 << 20)

    if hw_tile is None:
        hw_tile = _pick_hw_tile(hw_total, c, itemsize, x_budget, min_chunk)
    assert 0 < hw_tile <= hw_total
    assert hw_tile == hw_total or hw_tile % 128 == 0, \
        "hw_tile must be lane-aligned (multiple of 128) or the full H*W extent"

    num_chunks = pl.cdiv(hw_total, hw_tile)
    needs_mask = (hw_total % hw_tile) != 0

    kernel = functools.partial(
        _channel_attention_kernel,
        inv_hw=1.0 / hw_total, hw_total=hw_total, hw_tile=hw_tile,
        needs_mask=needs_mask)

    # VMEM: x double-buffer + resident weights (x2 safety) + padded (C,2)
    # accumulator + padded output blocks, plus headroom; never request more
    # than 85% of physical VMEM (important on v7x's 64 MiB).
    pad_c = max(c, 8)
    needed = (2 * c * hw_tile * itemsize
              + 4 * hidden * c * 4
              + pad_c * 128 * 4
              + 2 * pad_c * 128 * itemsize)
    vmem_limit = int(min(needed + (8 << 20), int(vmem_cap * 0.85)))
    vmem_limit = max(vmem_limit, 4 << 20)

    out = pl.pallas_call(
        kernel,
        out_shape=jax.ShapeDtypeStruct((n, c, 1), x.dtype),
        grid_spec=pltpu.PrefetchScalarGridSpec(
            num_scalar_prefetch=0,
            grid=(n, num_chunks),
            in_specs=[
                pl.BlockSpec((1, c, hw_tile), lambda b, k: (b, 0, k)),
                pl.BlockSpec((hidden, c), lambda b, k: (0, 0)),   # resident
                pl.BlockSpec((c, hidden), lambda b, k: (0, 0)),   # resident
            ],
            out_specs=pl.BlockSpec((1, c, 1), lambda b, k: (b, 0, 0)),
            scratch_shapes=[
                pltpu.VMEM((c, 2), jnp.float32),   # col 0: sum, col 1: max
            ],
        ),
        compiler_params=pltpu.CompilerParams(
            dimension_semantics=("parallel", "arbitrary"),
            vmem_limit_bytes=vmem_limit,
        ),
    )(x_flat, w1, w2)

    # match nn.Conv2d output shape (N, C, 1, 1)
    return out.reshape(n, c, 1, 1)


def _reference(x, w_fc1, w_fc2):
    """Pure-JAX reference mirroring the PyTorch forward."""
    n, c, h, w = x.shape
    hidden = w_fc1.shape[0]
    w1 = w_fc1.reshape(hidden, c)
    w2 = w_fc2.reshape(c, hidden)
    avg = jnp.mean(x.astype(jnp.float32), axis=(2, 3))        # (N, C)
    mx = jnp.max(x, axis=(2, 3)).astype(jnp.float32)          # (N, C)
    a = jnp.maximum(avg @ w1.T, 0.0) @ w2.T                   # (N, C)
    m = jnp.maximum(mx @ w1.T, 0.0) @ w2.T                    # (N, C)
    return jax.nn.sigmoid(a + m).astype(x.dtype).reshape(n, c, 1, 1)


if __name__ == "__main__":
    # in_planes must be divisible by 16 (module hardcodes // 16)
    N, C, H, W = 2, 32, 16, 16
    HIDDEN = C // 16

    key = jax.random.PRNGKey(0)
    kx, k1, k2, kx2 = jax.random.split(key, 4)

    x = jax.random.normal(kx, (N, C, H, W), dtype=jnp.float32)
    # Deterministic synthetic weights (Conv2d kernel shapes, no bias).
    w_fc1 = jax.random.normal(k1, (HIDDEN, C, 1, 1), dtype=jnp.float32) * 0.1
    w_fc2 = jax.random.normal(k2, (C, HIDDEN, 1, 1), dtype=jnp.float32) * 0.1

    ref = _reference(x, w_fc1, w_fc2)

    # Auto-picked tile (single chunk here) + forced 128-wide tile that
    # exercises the multi-chunk running-accumulator path (2 chunks).
    out_auto = jax.block_until_ready(channel_attention(x, w_fc1, w_fc2))
    out_tiled = jax.block_until_ready(
        channel_attention(x, w_fc1, w_fc2, hw_tile=128))

    assert out_auto.shape == (N, C, 1, 1)
    assert out_tiled.shape == (N, C, 1, 1)
    assert jnp.allclose(out_auto, ref, atol=1e-5, rtol=1e-5)
    assert jnp.allclose(out_tiled, ref, atol=1e-5, rtol=1e-5)

    # Non-128-multiple spatial (20x20 = 400, a common detector shape):
    # exercises the pl.cdiv grid + tail-masking path (negative inputs check
    # that padding lanes never leak into the max).
    x2 = jax.random.normal(kx2, (N, C, 20, 20), dtype=jnp.float32)
    ref2 = _reference(x2, w_fc1, w_fc2)
    out2_auto = jax.block_until_ready(channel_attention(x2, w_fc1, w_fc2))
    out2_tiled = jax.block_until_ready(
        channel_attention(x2, w_fc1, w_fc2, hw_tile=128))
    assert jnp.allclose(out2_auto, ref2, atol=1e-5, rtol=1e-5)
    assert jnp.allclose(out2_tiled, ref2, atol=1e-5, rtol=1e-5)

    print("KERNEL_OK")
</pallas_src>

<mosaic_0001>
module attributes {stable_mosaic.version = 11 : i64} {
  func.func @_channel_attention_kernel(%arg0: i32, %arg1: i32, %arg2: memref<1x32x256xf32, #tpu.memory_space<vmem>>, %arg3: memref<2x32xf32, #tpu.memory_space<vmem>>, %arg4: memref<32x2xf32, #tpu.memory_space<vmem>>, %arg5: memref<1x32x1xf32, #tpu.memory_space<vmem>>, %arg6: memref<32x2xf32, #tpu.memory_space<vmem>>) attributes {dimension_semantics = [#tpu.dimension_semantics<parallel>, #tpu.dimension_semantics<arbitrary>], iteration_bounds = array<i64: 2, 1>, scalar_prefetch = 0 : i64, scratch_operands = 1 : i64, tpu.core_type = #tpu.core_type<tc>, window_params = [{transform_indices = @transform_0, window_bounds = array<i64: 1, 32, 256>}, {pipeline_mode = #tpu.pipeline_mode<synchronous>, transform_indices = @transform_1, window_bounds = array<i64: 2, 32>}, {pipeline_mode = #tpu.pipeline_mode<synchronous>, transform_indices = @transform_2, window_bounds = array<i64: 32, 2>}, {transform_indices = @transform_3, window_bounds = array<i64: 1, 32, 1>}]} {
    %c0_i32 = arith.constant 0 : i32
    %0 = arith.cmpi eq, %arg1, %c0_i32 : i32
    %1 = arith.extui %0 : i1 to i32
    %c0_i32_0 = arith.constant 0 : i32
    %2 = arith.cmpi ne, %1, %c0_i32_0 : i32
    scf.if %2 {
      %cst_13 = arith.constant 0.000000e+00 : f32
      %18 = vector.broadcast %cst_13 : f32 to vector<32x1xf32>
      %c0_14 = arith.constant 0 : index
      %c0_15 = arith.constant 0 : index
      %19 = vector.load %arg6[%c0_14, %c0_15] : memref<32x2xf32, #tpu.memory_space<vmem>>, vector<32x1xf32>
      tpu.vector_store %arg6[%c0_14, %c0_15], %18 {strides = array<i32>} : memref<32x2xf32, #tpu.memory_space<vmem>>, vector<32x1xf32>,
      %cst_16 = arith.constant 0xFF800000 : f32
      %20 = vector.broadcast %cst_16 : f32 to vector<32x1xf32>
      %c0_17 = arith.constant 0 : index
      %c1_18 = arith.constant 1 : index
      %21 = vector.load %arg6[%c0_17, %c1_18] : memref<32x2xf32, #tpu.memory_space<vmem>>, vector<32x1xf32>
      tpu.vector_store %arg6[%c0_17, %c1_18], %20 {strides = array<i32>} : memref<32x2xf32, #tpu.memory_space<vmem>>, vector<32x1xf32>,
    } else {
    }
    %c0 = arith.constant 0 : index
    %c0_1 = arith.constant 0 : index
    %c0_2 = arith.constant 0 : index
    %3 = vector.load %arg2[%c0, %c0_1, %c0_2] : memref<1x32x256xf32, #tpu.memory_space<vmem>>, vector<1x32x256xf32>
    %4 = vector.shape_cast %3 : vector<1x32x256xf32> to vector<32x256xf32>
    %c0_3 = arith.constant 0 : index
    %c0_4 = arith.constant 0 : index
    %5 = vector.load %arg6[%c0_3, %c0_4] : memref<32x2xf32, #tpu.memory_space<vmem>>, vector<32x1xf32>
    %cst = arith.constant dense<0.000000e+00> : vector<32xf32>
    %6 = vector.multi_reduction <add>, %4, %cst [1] : vector<32x256xf32> to vector<32xf32>
    %7 = vector.shape_cast %6 : vector<32xf32> to vector<32x1xf32>
    %8 = arith.addf %5, %7 : vector<32x1xf32>
    %c0_5 = arith.constant 0 : index
    %c0_6 = arith.constant 0 : index
    %9 = vector.load %arg6[%c0_5, %c0_6] : memref<32x2xf32, #tpu.memory_space<vmem>>, vector<32x1xf32>
    tpu.vector_store %arg6[%c0_5, %c0_6], %8 {strides = array<i32>} : memref<32x2xf32, #tpu.memory_space<vmem>>, vector<32x1xf32>,
    %c0_7 = arith.constant 0 : index
    %c1 = arith.constant 1 : index
    %10 = vector.load %arg6[%c0_7, %c1] : memref<32x2xf32, #tpu.memory_space<vmem>>, vector<32x1xf32>
    %cst_8 = arith.constant dense<0xFF800000> : vector<32xf32>
    %11 = vector.multi_reduction <maximumf>, %4, %cst_8 [1] : vector<32x256xf32> to vector<32xf32>
    %12 = vector.shape_cast %11 : vector<32xf32> to vector<32x1xf32>
    %13 = arith.maximumf %10, %12 : vector<32x1xf32>
    %c0_9 = arith.constant 0 : index
    %c1_10 = arith.constant 1 : index
    %14 = vector.load %arg6[%c0_9, %c1_10] : memref<32x2xf32, #tpu.memory_space<vmem>>, vector<32x1xf32>
    tpu.vector_store %arg6[%c0_9, %c1_10], %13 {strides = array<i32>} : memref<32x2xf32, #tpu.memory_space<vmem>>, vector<32x1xf32>,
    %c0_i32_11 = arith.constant 0 : i32
    %15 = arith.cmpi eq, %arg1, %c0_i32_11 : i32
    %16 = arith.extui %15 : i1 to i32
    %c0_i32_12 = arith.constant 0 : i32
    %17 = arith.cmpi ne, %16, %c0_i32_12 : i32
    scf.if %17 {
      %c0_13 = arith.constant 0 : index
      %c0_14 = arith.constant 0 : index
      %18 = vector.load %arg3[%c0_13, %c0_14] : memref<2x32xf32, #tpu.memory_space<vmem>>, vector<2x32xf32>
      %c0_15 = arith.constant 0 : index
      %c0_16 = arith.constant 0 : index
      %19 = vector.load %arg6[%c0_15, %c0_16] : memref<32x2xf32, #tpu.memory_space<vmem>>, vector<32x2xf32>
      %cst_17 = arith.constant dense<0.000000e+00> : vector<2x2xf32>
      %20 = tpu.matmul %18, %19, %cst_17 {dimension_numbers = #tpu.dot_dimension_numbers<[1], [0], [0], [1], [0, 0, 1, 1], [], []>} : vector<2x32xf32>, vector<32x2xf32>, vector<2x2xf32> -> vector<2x2xf32>
      %cst_18 = arith.constant 0.000000e+00 : f32
      %21 = vector.broadcast %cst_18 : f32 to vector<2x2xf32>
      %22 = arith.maximumf %20, %21 : vector<2x2xf32>
      %23 = vector.extract_strided_slice %22 {offsets = [0, 0], sizes = [2, 1], strides = [1, 1]} : vector<2x2xf32> to vector<2x1xf32>
      %cst_19 = arith.constant 3.906250e-03 : f32
      %24 = vector.broadcast %cst_19 : f32 to vector<2x1xf32>
      %25 = arith.mulf %23, %24 : vector<2x1xf32>
      %26 = vector.extract_strided_slice %22 {offsets = [0, 1], sizes = [2, 1], strides = [1, 1]} : vector<2x2xf32> to vector<2x1xf32>
      %27 = arith.addf %25, %26 : vector<2x1xf32>
      %c0_20 = arith.constant 0 : index
      %c0_21 = arith.constant 0 : index
      %28 = vector.load %arg4[%c0_20, %c0_21] : memref<32x2xf32, #tpu.memory_space<vmem>>, vector<32x2xf32>
      %cst_22 = arith.constant dense<0.000000e+00> : vector<32x1xf32>
      %29 = tpu.matmul %28, %27, %cst_22 {dimension_numbers = #tpu.dot_dimension_numbers<[1], [0], [0], [1], [0, 0, 1, 1], [], []>} : vector<32x2xf32>, vector<2x1xf32>, vector<32x1xf32> -> vector<32x1xf32>
      %30 = arith.negf %29 : vector<32x1xf32>
      %31 = math.exp %30 : vector<32x1xf32>
      %cst_23 = arith.constant 1.000000e+00 : f32
      %32 = vector.broadcast %cst_23 : f32 to vector<32x1xf32>
      %33 = arith.addf %32, %31 : vector<32x1xf32>
      %34 = arith.divf %32, %33 : vector<32x1xf32>
      %35 = vector.shape_cast %34 : vector<32x1xf32> to vector<1x32x1xf32>
      %c0_24 = arith.constant 0 : index
      %c0_25 = arith.constant 0 : index
      %c0_26 = arith.constant 0 : index
      %36 = vector.load %arg5[%c0_24, %c0_25, %c0_26] : memref<1x32x1xf32, #tpu.memory_space<vmem>>, vector<1x32x1xf32>
      tpu.vector_store %arg5[%c0_24, %c0_25, %c0_26], %35 {strides = array<i32>} : memref<1x32x1xf32, #tpu.memory_space<vmem>>, vector<1x32x1xf32>,
    } else {
    }
    return
  }
  func.func @transform_0(%arg0: i32, %arg1: i32) -> (i32, i32, i32) {
    %c0_i32 = arith.constant 0 : i32
    %c0_i32_0 = arith.constant 0 : i32
    return %arg0, %c0_i32, %arg1 : i32, i32, i32
  }
  func.func @transform_1(%arg0: i32, %arg1: i32) -> (i32, i32) {
    %c0_i32 = arith.constant 0 : i32
    %c0_i32_0 = arith.constant 0 : i32
    %c0_i32_1 = arith.constant 0 : i32
    return %c0_i32, %c0_i32_0 : i32, i32
  }
  func.func @transform_2(%arg0: i32, %arg1: i32) -> (i32, i32) {
    %c0_i32 = arith.constant 0 : i32
    %c0_i32_0 = arith.constant 0 : i32
    %c0_i32_1 = arith.constant 0 : i32
    return %c0_i32, %c0_i32_0 : i32, i32
  }
  func.func @transform_3(%arg0: i32, %arg1: i32) -> (i32, i32, i32) {
    %c0_i32 = arith.constant 0 : i32
    %c0_i32_0 = arith.constant 0 : i32
    %c0_i32_1 = arith.constant 0 : i32
    return %arg0, %c0_i32, %c0_i32_0 : i32, i32, i32
  }
}

</mosaic_0001>

<bundles_post_ra>
// kernel: tpu_custom_call.1
= control target key start
LH: loop header
LB: loop body
LE: loop exit
PB: predicated region body
PF: predicated region fallthrough
CT: control target
= control target key end

     0   :  { %8 = vsyncpa [#allocation4], 0  ;;  %s963_s0 = inlined_call_operand.hbm [shape: f32[2,32,256], index: 0, kind: input, shape index: {}]   ;;  %s964_s1 = inlined_call_operand.vmem [shape: f32[2,32], index: 1, kind: input, shape index: {}]   ;;  %s965_s2 = inlined_call_operand.vmem [shape: f32[32,2], index: 2, kind: input, shape index: {}]   ;;  %s966_s3 = inlined_call_operand.vmem [shape: f32[2,32,1], index: 3, kind: output, shape index: {}]  }
   0x1   :  { %10 = vsyncpa [#allocation4 + $0x1], 0  ;;  %s819_s12 = smov 0   ;;  %s821_s13 = smov 0  }
   0x2   :  { %s823_s14 = smov 0   ;;  %s825_s15 = smov 0  }
   0x3   :  { %s827_s16 = smov 0   ;;  %s829_s17 = smov 0  }
   0x4 LB: > { %s581_s18 = sadd.s32 4294967295, %s790_s17   ;;  %s28_s19 = sadd.s32 1, %s786_s16  ;;  %s790_s17 = sphi %s829_s17, %s16_s17   ;;  %s786_s16 = sphi %s827_s16, %s974_s16   ;;  %s782_s15 = sphi %s825_s15, %s973_s15   ;;  %s778_s14 = sphi %s823_s14, %s972_s14   ;;  %s774_s13 = sphi %s821_s13, %s971_s13   ;;  %s770_s12 = sphi %s819_s12, %s970_s12  }
   0x5   : > { %p30_p0 = scmp.ge.s32.totalorder %s28_s19, 2  ;;  %s37_s20 = sadd.s32 1, %s778_s14 }
   0x6   : > { %p44_p1 = scmp.ne.s32.totalorder %s778_s14, %s774_s13  ;;  %p45_p2 = scmp.eq.s32.totalorder %s790_s17, 0 }
   0x7   : > { %s976_s19 = smov (%p30_p0, %s28_s19), 0  ;;  %p50_p4 = scmp.ne.s32.totalorder %s774_s13, %s770_s12 }
   0x8   : > { %p855_p3 = por %p45_p2, %p44_p1  ;;  %s32_s22 = ssub.s32 %s786_s16, %s976_s19 }
   0x9   : > { %p51_p5 = scmp.eq.s32.totalorder %s581_s18, 0  ;;  %p35_p6 = scmp.eq.s32.totalorder %s32_s22, 0 }
   0xa   : > { %p641_p8 = scmp.lt.s32.totalorder %s790_s17, 2  ;;  %s148_s25 = sand.u32 1, %s778_s14  }
   0xb   : > { %p862_p7 = por %p51_p5, %p50_p4  ;;  %s604_s26 = sshll.u32 %s786_s16, 10 }
   0xc   : > { %s868_s24 = scalar_select %p35_p6, %s778_s14, %s37_s20  }
   0xd   : > { %s585_s27 = sshll.u32 %s148_s25, 6  ;;  %s160_s30 = scalar_lea.hbm %s963_s0, %s604_s26 }
   0xe   : > { %s152_s4 = scalar_lea.vmem [#allocation3], %s585_s27  ;;  %p877_p9 = pnand %p641_p8, %p855_p3 }
   0xf   : > { %s161_s5 = sshll.u32 %s152_s4, 4  ;;  %s149_s7 = scalar_lea.sflag [#allocation4], %s148_s25  ;;  %s162_s5 = int_to_ptr.vmem [resolvable:$true] %s161_s5 }
  0x10   : > { %p714_p10 = pneg %p877_p9  ;;  %s725_s8 = scalar_lea.vmem %s162_s5, 1024 }
  0x11   : > { %p726_p11 = scmp.ne.s32.totalorder %s162_s5, %s725_s8  ;;  %s792_s9 = smov [#allocation3]  }
  0x12   : > { %s730_s10 = sshll.u32 %s792_s9, 4  ;;  %s731_s10 = int_to_ptr.vmem [resolvable:$false] %s730_s10 }
  0x13   : > { %p728_p12 = pnand %p726_p11, %p714_p10  ;;  %s732_s11 = scalar_lea.vmem %s731_s10, 2048 }
  0x14   : > { %p733_p0 = scmp.lt.s32.totalorder %s162_s5, %s731_s10  ;;  %p734_p1 = scmp.lt.s32.totalorder %s732_s11, %s725_s8 }
  0x15   : > { %p729_p13 = pneg %p728_p12 }
  0x16   : > { %p735_p2 = por %p734_p1, %p733_p0 }
  0x18   : > { %p736_p3 = pnand %p735_p2, %p729_p13 }
  0x1a   : > { %739 = shalt.err (!%p736_p3)
}
  0x1b   : > { %s793_s12 = smov 256   ;;  %s794_s18 = smov 16  }
  0x1c   : > { %640 = dma.hbm_to_vmem [thread:$0]  (!%p877_p9), %s160_s30, 1024, %s162_s5, %s149_s7, %s793_s12, %s793_s12, %s794_s18  }
  0x1d   : > { %p588_p4 = scmp.ge.s32.totalorder %s790_s17, 1  ;;  %p169_p5 = scmp.lt.s32.totalorder %s790_s17, 3 }
  0x1f   : > { %p170_p6 = pnand %p588_p4, %p169_p5 }
  0x20   : > { %s175_s20 = sand.u32 (!%p170_p6), 1, %s774_s13  }
  0x21   : > { %173 = sbr.rel (%p170_p6) target bundleno = 756 (0x2f4), region = 32  ;;  %s589_s21 = sshll.u32 (!%p170_p6), %s175_s20, 6 }
  0x22   : > { %s176_s22 = scalar_lea.sflag (!%p170_p6), [#allocation4], %s175_s20  ;;  %s179_s25 = scalar_lea.vmem (!%p170_p6), [#allocation3], %s589_s21 }
  0x26   : > { %765 = dma.done.wait (%p862_p7), %s176_s22, 1024  }
  0x27   : > { %767 = vsyncadd (%p862_p7), %s176_s22, 4294966272  ;;  %vm212_vm0 = vcmask 7168   ;;  %vm217_vm1 = vcmask 15368   ;;  %v795_v0 = vmov 0.0   ;;  %v796_v1 = vmov -inf   ;;  %v228_v2 = vld [vmem:[%s179_s25 + $0x30] sm:$0xff] }
  0x28   : > { %216 = vst.msk [vmem:[#allocation2 + $0x18] sm:$0xff] %vm212_vm0, %v795_v0  ;;  %213 = vst.msk [vmem:[#allocation2] sm:$0xff] %vm212_vm0, %v795_v0  ;;  %616 = vmatprep.subr.mxu0 %v795_v0  ;;  %v229_v3 = vld [vmem:[%s179_s25 + $0x38] sm:$0xff]  ;;  %v226_v4 = vld [vmem:[%s179_s25 + $0x20] sm:$0xff]  ;;  %vm797_vm2 = vmmov 0   ;;  %vm288_vm3 = vcmask 261120  }
  0x29   : > { %214 = vst.msk [vmem:[#allocation2 + $0x8] sm:$0xff] %vm212_vm0, %v795_v0  ;;  %215 = vst.msk [vmem:[#allocation2 + $0x10] sm:$0xff] %vm212_vm0, %v795_v0  ;;  %v243_v5 = vadd.f32 %v229_v3, %v228_v2  ;;  %v227_v6 = vld [vmem:[%s179_s25 + $0x28] sm:$0xff]  ;;  %v224_v7 = vld [vmem:[%s179_s25 + $0x10] sm:$0xff]  ;;  %v268_v14 = vmax.f32 %v228_v2, %v229_v3  ;;  %624 = vmatprep.mubr.msk.f32.mxu0 %vm797_vm2, %v795_v0  ;;  %vm373_vm4 = vcmask 15360   ;;  %s798_s29 = smov 127  }
  0x2a   : > { %221 = vst.msk [vmem:[#allocation2 + $0x18] sm:$0xff] %vm217_vm1, %v796_v1  ;;  %220 = vst.msk [vmem:[#allocation2 + $0x10] sm:$0xff] %vm217_vm1, %v796_v1  ;;  %v225_v8 = vld [vmem:[%s179_s25 + $0x18] sm:$0xff]  ;;  %v222_v10 = vld [vmem:[%s179_s25] sm:$0xff]  ;;  %v240_v12 = vadd.f32 %v227_v6, %v226_v4  ;;  %v265_v15 = vmax.f32 %v226_v4, %v227_v6  ;;  %vm386_vm5 = vcmask 1041408   ;;  %p203_p7 = scmp.lt.s32.totalorder %s782_s15, 1 }
  0x2b   : > { %218 = vst.msk [vmem:[#allocation2] sm:$0xff] %vm217_vm1, %v796_v1  ;;  %219 = vst.msk [vmem:[#allocation2 + $0x8] sm:$0xff] %vm217_vm1, %v796_v1  ;;  %v237_v9 = vadd.f32 %v225_v8, %v224_v7  ;;  %v223_v11 = vld [vmem:[%s179_s25 + $0x8] sm:$0xff]  ;;  %244 = vadd.xlane.f32.xlu0 %v243_v5  ;;  %v262_v16 = vmax.f32 %v224_v7, %v225_v8  ;;  %v283_v46 = vld [vmem:[%s964_s1] sm:$0x3] }
  0x2c   : > { %v234_v13 = vadd.f32 %v223_v11, %v222_v10  ;;  %v259_v17 = vmax.f32 %v222_v10, %v223_v11  ;;  %v369_v47 = vld [vmem:[%s965_s2] sm:$0xff]  ;;  %v370_v54 = vld [vmem:[%s965_s2 + $0x8] sm:$0xff]  ;;  %v371_v55 = vld [vmem:[%s965_s2 + $0x10] sm:$0xff]  ;;  %s978_s15 = smov (!%p203_p7, %s782_s15), 1 }
  0x2d   : > { %238 = vadd.xlane.f32.xlu1 %v237_v9  ;;  %629 = vmatprep.mubr.msk.f32.mxu1 %vm373_vm4, %v369_v47  ;;  %v372_v56 = vld [vmem:[%s965_s2 + $0x18] sm:$0xff]  ;;  %s605_s9 = sshll.u32 %s978_s15, 5 }
  0x2e   : > { %s207_s12 = scalar_lea.vmem %s966_s3, %s605_s9 }
  0x2f   : > { %241 = vadd.xlane.f32.xlu0 %v240_v12 }
  0x31   : > { %235 = vadd.xlane.f32.xlu1 %v234_v13  ;;  %v233_v18 = vld [vmem:[#allocation2 + $0x18] sm:$0xff]  ;;  %v232_v23 = vld [vmem:[#allocation2 + $0x10] sm:$0xff] }
  0x32   : > { %v231_v19 = vld [vmem:[#allocation2 + $0x8] sm:$0xff]  ;;  %v230_v25 = vld [vmem:[#allocation2] sm:$0xff] }
  0x33   : > { %269 = vmax.xlane.f32.xlu0 %v268_v14 }
  0x35   : > { %266 = vmax.xlane.f32.xlu1 %v265_v15 }
  0x37   : > { %263 = vmax.xlane.f32.xlu0 %v262_v16 }
  0x39   : > { %260 = vmax.xlane.f32.xlu1 %v259_v17 }
  0xb4   : > { %v245_v20 = vpop.xlane.xlu0 %244 }
  0xb5   : > { %v249_v21 = vadd.f32 %v245_v20, %v233_v18 }
  0xb6   : > { %v239_v22 = vpop.xlane.xlu1 %238 }
  0xb7   : > { %v247_v24 = vadd.f32 %v239_v22, %v231_v19  ;;  %254 = vst.msk [vmem:[#allocation2 + $0x18] sm:$0xff] %vm212_vm0, %v249_v21 }
  0xb8   : > { %v242_v26 = vpop.xlane.xlu0 %241 }
  0xb9   : > { %252 = vst.msk [vmem:[#allocation2 + $0x8] sm:$0xff] %vm212_vm0, %v247_v24  ;;  %v248_v27 = vadd.f32 %v242_v26, %v232_v23 }
  0xba   : > { %v236_v28 = vpop.xlane.xlu1 %235 }
  0xbb   : > { %v246_v29 = vadd.f32 %v236_v28, %v230_v25  ;;  %253 = vst.msk [vmem:[#allocation2 + $0x10] sm:$0xff] %vm212_vm0, %v248_v27 }
  0xbc   : > { %v270_v30 = vpop.xlane.xlu0 %269 }
  0xbd   : > { %251 = vst.msk [vmem:[#allocation2] sm:$0xff] %vm212_vm0, %v246_v29 }
  0xbe   : > { %v267_v31 = vpop.xlane.xlu1 %266  ;;  %v258_v32 = vld [vmem:[#allocation2 + $0x18] sm:$0xff] }
  0xbf   : > { %v274_v33 = vmax.f32 %v258_v32, %v270_v30 }
  0xc0   : > { %v256_v34 = vld [vmem:[#allocation2 + $0x8] sm:$0xff]  ;;  %v264_v35 = vpop.xlane.xlu0 %263 }
  0xc1   : > { %279 = vst.msk [vmem:[#allocation2 + $0x18] sm:$0xff] %vm217_vm1, %v274_v33  ;;  %v272_v36 = vmax.f32 %v256_v34, %v264_v35 }
  0xc2   : > { %v261_v37 = vpop.xlane.xlu1 %260  ;;  %v257_v38 = vld [vmem:[#allocation2 + $0x10] sm:$0xff] }
  0xc3   : > { %277 = vst.msk [vmem:[#allocation2 + $0x8] sm:$0xff] %vm217_vm1, %v272_v36  ;;  %v273_v39 = vmax.f32 %v257_v38, %v267_v31 }
  0xc4   : > { %v255_v40 = vld [vmem:[#allocation2] sm:$0xff] }
  0xc5   : > { %v271_v41 = vmax.f32 %v255_v40, %v261_v37  ;;  %278 = vst.msk [vmem:[#allocation2 + $0x10] sm:$0xff] %vm217_vm1, %v273_v39 }
  0xc7   : > { %276 = vst.msk [vmem:[#allocation2] sm:$0xff] %vm217_vm1, %v271_v41 }
  0xc8   : > { %v287_v42 = vld [vmem:[#allocation2 + $0x18] sm:$0xff] }
  0xc9   : > { %617 = vmatpush3.msra.mxu0 %v287_v42 }
  0xca   : > { %618 = vmatprep.subr.mxu0 %v795_v0  ;;  %v285_v44 = vld [vmem:[#allocation2 + $0x8] sm:$0xff] }
  0xcc   : > { %v286_v43 = vld [vmem:[#allocation2 + $0x10] sm:$0xff] }
  0xcd   : > { %619 = vmatpush3.msra.mxu0 %v286_v43 }
  0xce   : > { %620 = vmatprep.subr.mxu0 %v795_v0  ;;  %v284_v45 = vld [vmem:[#allocation2] sm:$0xff] }
  0xcf   : > { %621 = vmatpush3.msra.mxu0 %v285_v44 }
  0xd0   : > { %622 = vmatprep.subr.mxu0 %v795_v0 }
  0xd1   : > { %623 = vmatpush3.msra.mxu0 %v284_v45 }
  0xd2   : > { %625 = vmatmul.mubr.msk.f32.vlgmr.msra.gmra.mxu0 %vm288_vm3, %v283_v46 }
 0x192   : > { %v358_v48 = vpop.f32.mrf.mxu0 }
 0x193   : > { %v362_v49 = vmax.f32 %v358_v48, 0.0 }
 0x194   : > { %v626_v50 = vpop.f32.mrf.mxu0 }
 0x195   : > { %365 = vrot.lane.b32.xlu0 %v362_v49, %s798_s29  ;;  %v363_v51 = vmul.f32 0.00390625, %v362_v49 }
 0x207   : > { %v366_v52 = vpop.permute.xlu0 %365 }
 0x208   : > { %v368_v53 = vadd.f32 %v366_v52, %v363_v51 }
 0x20a   : > { %627 = vmatprep.subr.msk.mxu1 %vm386_vm5, %v368_v53 }
 0x20b   : > { %628 = vmatpush3.msk.msra.mxu1 %vm386_vm5, %v368_v53 }
 0x20c   : > { %630 = vmatmul.mubr.msk.f32.vlgmr.msra.gmra.mxu1 %vm373_vm4, %v370_v54 }
 0x20d   : > { %632 = vmatprep.mubr.msk.f32.mxu1 %vm373_vm4, %v371_v55 }
 0x210   : > { %633 = vmatmul.mubr.msk.f32.gmra.mxu1 %vm373_vm4, %v372_v56 }
 0x2cc   : > { %v631_v57 = vpop.f32.mrf.mxu1 }
 0x2cd   : > { %v599_v58 = vmul.f32 -1.442695, %v631_v57 }
 0x2ce   : > { %v456_v59 = vpop.f32.mrf.mxu1 }
 0x2cf   : > { %696 = vpow2.f32 %v599_v58  ;;  %v598_v60 = vmul.f32 -1.442695, %v456_v59 }
 0x2d0   : > { %v634_v61 = vpop.f32.mrf.mxu1 }
 0x2d1   : > { %698 = vpow2.f32 %v598_v60  ;;  %v601_v62 = vmul.f32 -1.442695, %v634_v61 }
 0x2d2   : > { %v466_v63 = vpop.f32.mrf.mxu1 }
 0x2d3   : > { %700 = vpow2.f32 %v601_v62  ;;  %v600_v0 = vmul.f32 -1.442695, %v466_v63 }
 0x2d5   : > { %702 = vpow2.f32 %v600_v0 }
 0x2dc   : > { %v697_v1 = vpop.eup %696 }
 0x2dd   : > { %v488_v2 = vadd.f32 1.0, %v697_v1 }
 0x2de   : > { %v699_v3 = vpop.eup %698 }
 0x2df   : > { %704 = vrcp.f32 %v488_v2  ;;  %v487_v4 = vadd.f32 1.0, %v699_v3 }
 0x2e0   : > { %v701_v5 = vpop.eup %700 }
 0x2e1   : > { %706 = vrcp.f32 %v487_v4  ;;  %v490_v6 = vadd.f32 1.0, %v701_v5 }
 0x2e2   : > { %v703_v7 = vpop.eup %702 }
 0x2e3   : > { %708 = vrcp.f32 %v490_v6  ;;  %v489_v8 = vadd.f32 1.0, %v703_v7 }
 0x2e5   : > { %710 = vrcp.f32 %v489_v8 }
 0x2ec   : > { %v705_v9 = vpop.eup %704 }
 0x2ed   : > { %500 = vst.msk [vmem:[%s207_s12 + $0x8] sm:$0xff] %vm212_vm0, %v705_v9 }
 0x2ee   : > { %v707_v10 = vpop.eup %706 }
 0x2ef   : > { %499 = vst.msk [vmem:[%s207_s12] sm:$0xff] %vm212_vm0, %v707_v10 }
 0x2f0   : > { %v709_v11 = vpop.eup %708 }
 0x2f1   : > { %502 = vst.msk [vmem:[%s207_s12 + $0x18] sm:$0xff] %vm212_vm0, %v709_v11 }
 0x2f2   : > { %v711_v12 = vpop.eup %710 }
 0x2f3   : > { %501 = vst.msk [vmem:[%s207_s12 + $0x10] sm:$0xff] %vm212_vm0, %v711_v12 }
 0x2f4 PF: > { %s16_s17 = sadd.s32 1, %s790_s17   ;;  %s970_s12 = smov %s774_s13 }
 0x2f5   : > { %p13_p8 = scmp.ge.s32.totalorder %s16_s17, 4   ;;  %s971_s13 = smov %s778_s14 }
 0x2f6   : > { %s972_s14 = smov %s868_s24  ;;  %s973_s15 = smov %s786_s16 }
 0x2f7   : > { %s974_s16 = smov %s976_s19  ;;  %15 = sbr.rel (!%p13_p8) target bundleno = 4 (0x4), region = 80 }
 0x2fc   :  { %524 = vsyncpa [#allocation4], 1 }
 0x2fd   :  { %526 = vsyncpa [#allocation4 + $0x1], 1 }

</bundles_post_ra>
